<compile_context>
chip_gen: v7x
topology: tpu7x:2x2x1
jax: 0.10.0
libtpu: 0.0.40
codegen_flags: <defaults>
</compile_context>

<pallas_src>
import functools

import jax
import jax.numpy as jnp
from jax.experimental import pallas as pl
from jax.experimental.pallas import tpu as pltpu

LANES = 128
MAX_ROW_TILE = 4096  # rows per grid step -> 2 MiB f32 per input block


def _bce_sum_kernel(x_ref, z_ref, o_ref, *,
                    nb_total, n_valid, row_tile, acc_rows, needs_mask):
    """Accumulates numerically-stable BCE-with-logits partial sums.

    stable form: max(x, 0) - x*z + log1p(exp(-|x|))
    The (1, acc_rows, LANES) output block is resident across the reduction
    axis and acts as the accumulator; the cheap final cross-lane reduce and
    the mean division happen in the wrapper.
    """
    c = pl.program_id(0)          # core / parallel axis
    i = pl.program_id(1)          # reduction axis (blocks of rows)
    nb_inner = pl.num_programs(1)
    blk = c * nb_inner + i        # global block index

    @pl.when(i == 0)
    def _init():
        o_ref[...] = jnp.zeros_like(o_ref)

    def partial_sum(loss):
        # In-vreg block reduction -> (1, acc_rows, LANES); pure VPU adds.
        if acc_rows == 8:
            return loss.reshape(1, row_tile // 8, 8, LANES).sum(axis=1)
        return loss.sum(axis=0, keepdims=True)[None]

    @pl.when(blk < nb_total)      # skip clamped duplicate blocks (odd splits)
    def _compute():
        x = x_ref[...].astype(jnp.float32)
        z = z_ref[...].astype(jnp.float32)
        loss = jnp.maximum(x, 0.0) - x * z + jnp.log1p(jnp.exp(-jnp.abs(x)))
        if needs_mask:
            last = nb_total - 1
            # Static count of valid elements inside the last block.
            local_valid = n_valid - last * row_tile * LANES

            @pl.when(blk == last)
            def _tail():
                ridx = jax.lax.broadcasted_iota(jnp.int32, (row_tile, LANES), 0)
                lidx = jax.lax.broadcasted_iota(jnp.int32, (row_tile, LANES), 1)
                keep = (ridx * LANES + lidx) < local_valid
                # Keep this a select (not a multiply): OOB/pad data may be
                # garbage and has already gone through exp/log1p.
                o_ref[...] += partial_sum(jnp.where(keep, loss, 0.0))

            @pl.when(blk != last)
            def _body():
                o_ref[...] += partial_sum(loss)
        else:
            o_ref[...] += partial_sum(loss)


@jax.jit
def criterion_forward(output, label):
    """JAX/Pallas equivalent of Criterion()(output, label).

    output: [N, 1, H, W] float logits (NCHW)  (or same-ndim as label)
    label : [N, H, W] float targets in [0, 1]
    returns scalar float32 loss (mean BCE-with-logits).
    """
    x_flat = output.reshape(-1)

    # glue: PyTorch does label.unsqueeze(1) when ndims differ. For C==1 the
    # flattened element order already matches, so no broadcast copy is needed.
    if output.ndim == label.ndim:
        z_src = label
    elif output.ndim == label.ndim + 1 and output.shape[1] == 1:
        z_src = label
    else:
        z_src = jnp.broadcast_to(jnp.expand_dims(label, 1), output.shape)
    z_flat = z_src.reshape(-1)

    n_valid = x_flat.shape[0]  # static

    rem = n_valid % LANES
    if rem:
        # TODO(synk): this pad is a full HBM copy of both inputs; it only
        # triggers when N*H*W % 128 != 0.  A 1-D BlockSpec refactor (blocks of
        # row_tile*LANES on the flat arrays, reshape in-kernel) would remove it.
        pad = LANES - rem
        x_flat = jnp.pad(x_flat, (0, pad))
        z_flat = jnp.pad(z_flat, (0, pad))

    rows = x_flat.shape[0] // LANES
    x2 = x_flat.reshape(rows, LANES)
    z2 = z_flat.reshape(rows, LANES)

    row_tile = min(rows, MAX_ROW_TILE)           # full-dim block when small
    nb_total = pl.cdiv(rows, row_tile)
    n_par = 2 if nb_total >= 2 else 1            # split across 2 TCs on v7x
    nb_per_core = pl.cdiv(nb_total, n_par)
    needs_mask = (nb_total * row_tile * LANES) != n_valid
    acc_rows = 8 if row_tile % 8 == 0 else 1     # vreg-shaped accumulator

    if n_par * nb_per_core == nb_total:
        def in_map(c, i):
            return (c * nb_per_core + i, 0)
    else:
        # Odd number of blocks: clamp the one extra step; its compute is gated.
        def in_map(c, i):
            return (jnp.minimum(c * nb_per_core + i, nb_total - 1), 0)

    tile_spec = pl.BlockSpec((row_tile, LANES), in_map)

    kernel = functools.partial(
        _bce_sum_kernel,
        nb_total=nb_total,
        n_valid=n_valid,
        row_tile=row_tile,
        acc_rows=acc_rows,
        needs_mask=needs_mask,
    )

    partials = pl.pallas_call(
        kernel,
        out_shape=jax.ShapeDtypeStruct((n_par, acc_rows, LANES), jnp.float32),
        grid_spec=pltpu.PrefetchScalarGridSpec(
            num_scalar_prefetch=0,
            grid=(n_par, nb_per_core),
            in_specs=[tile_spec, tile_spec],
            out_specs=pl.BlockSpec((1, acc_rows, LANES), lambda c, i: (c, 0, 0)),
        ),
        compiler_params=pltpu.CompilerParams(
            # TODO(synk): on v7x, try pltpu.CORE_PARALLEL on the leading axis
            # (or pl.core_map) if profiling shows only one TensorCore active.
            dimension_semantics=("parallel", "arbitrary"),
        ),
    )(x2, z2)

    return jnp.sum(partials) / jnp.float32(n_valid)


def _reference(output, label):
    """Pure-JAX reference of BCEWithLogitsLoss(output, label.unsqueeze(1))."""
    x = output.astype(jnp.float32)
    if output.ndim == label.ndim:
        z = label.astype(jnp.float32)
    else:
        z = jnp.broadcast_to(label[:, None, ...], output.shape).astype(jnp.float32)
    loss = jnp.maximum(x, 0.0) - x * z + jnp.log1p(jnp.exp(-jnp.abs(x)))
    return jnp.mean(loss)


if __name__ == "__main__":
    key = jax.random.PRNGKey(0)
    k1, k2, k3, k4 = jax.random.split(key, 4)

    # Segmentation-style logits: [N, 1, H, W], lane-aligned flat size.
    N, C, H, W = 2, 1, 16, 16
    output = jax.random.normal(k1, (N, C, H, W), dtype=jnp.float32)
    label = (jax.random.uniform(k2, (N, H, W)) > 0.5).astype(jnp.float32)

    loss = jax.block_until_ready(criterion_forward(output, label))
    ref = _reference(output, label)
    assert jnp.allclose(loss, ref, rtol=1e-5, atol=1e-5), (loss, ref)

    # Odd spatial size: exercises the lane-pad + ragged-tail mask path.
    H2, W2 = 15, 13
    output2 = jax.random.normal(k3, (N, C, H2, W2), dtype=jnp.float32)
    label2 = (jax.random.uniform(k4, (N, H2, W2)) > 0.5).astype(jnp.float32)

    loss2 = jax.block_until_ready(criterion_forward(output2, label2))
    ref2 = _reference(output2, label2)
    assert jnp.allclose(loss2, ref2, rtol=1e-5, atol=1e-5), (loss2, ref2)

    print("KERNEL_OK")
</pallas_src>

<mosaic_0001>
module attributes {stable_mosaic.version = 11 : i64} {
  func.func @_bce_sum_kernel(%arg0: i32, %arg1: i32, %arg2: memref<4x128xf32, #tpu.memory_space<vmem>>, %arg3: memref<4x128xf32, #tpu.memory_space<vmem>>, %arg4: memref<1x1x128xf32, #tpu.memory_space<vmem>>) attributes {dimension_semantics = [#tpu.dimension_semantics<parallel>, #tpu.dimension_semantics<arbitrary>], iteration_bounds = array<i64: 1, 1>, scalar_prefetch = 0 : i64, scratch_operands = 0 : i64, tpu.core_type = #tpu.core_type<tc>, window_params = [{transform_indices = @transform_0, window_bounds = array<i64: 4, 128>}, {transform_indices = @transform_1, window_bounds = array<i64: 4, 128>}, {transform_indices = @transform_2, window_bounds = array<i64: 1, 1, 128>}]} {
    %c1_i32 = arith.constant 1 : i32
    %0 = arith.muli %arg0, %c1_i32 : i32
    %1 = arith.addi %0, %arg1 : i32
    %c0_i32 = arith.constant 0 : i32
    %2 = arith.cmpi eq, %arg1, %c0_i32 : i32
    %3 = arith.extui %2 : i1 to i32
    %c0_i32_0 = arith.constant 0 : i32
    %4 = arith.cmpi ne, %3, %c0_i32_0 : i32
    scf.if %4 {
      %cst = arith.constant 0.000000e+00 : f32
      %8 = vector.broadcast %cst : f32 to vector<1x1x128xf32>
      %c0 = arith.constant 0 : index
      %c0_3 = arith.constant 0 : index
      %c0_4 = arith.constant 0 : index
      %9 = vector.load %arg4[%c0, %c0_3, %c0_4] : memref<1x1x128xf32, #tpu.memory_space<vmem>>, vector<1x1x128xf32>
      tpu.vector_store %arg4[%c0, %c0_3, %c0_4], %8 {strides = array<i32>} : memref<1x1x128xf32, #tpu.memory_space<vmem>>, vector<1x1x128xf32>,
    } else {
    }
    %c1_i32_1 = arith.constant 1 : i32
    %5 = arith.cmpi slt, %1, %c1_i32_1 : i32
    %6 = arith.extui %5 : i1 to i32
    %c0_i32_2 = arith.constant 0 : i32
    %7 = arith.cmpi ne, %6, %c0_i32_2 : i32
    scf.if %7 {
      %c0 = arith.constant 0 : index
      %c0_3 = arith.constant 0 : index
      %8 = vector.load %arg2[%c0, %c0_3] : memref<4x128xf32, #tpu.memory_space<vmem>>, vector<4x128xf32>
      %c0_4 = arith.constant 0 : index
      %c0_5 = arith.constant 0 : index
      %9 = vector.load %arg3[%c0_4, %c0_5] : memref<4x128xf32, #tpu.memory_space<vmem>>, vector<4x128xf32>
      %cst = arith.constant 0.000000e+00 : f32
      %10 = vector.broadcast %cst : f32 to vector<4x128xf32>
      %11 = arith.maximumf %8, %10 : vector<4x128xf32>
      %12 = arith.mulf %8, %9 : vector<4x128xf32>
      %13 = arith.subf %11, %12 : vector<4x128xf32>
      %14 = math.absf %8 : vector<4x128xf32>
      %cst_6 = arith.constant 0.000000e+00 : f32
      %15 = vector.broadcast %cst_6 : f32 to vector<4x128xf32>
      %16 = arith.subf %15, %14 : vector<4x128xf32>
      %17 = math.exp %16 : vector<4x128xf32>
      %18 = math.log1p %17 : vector<4x128xf32>
      %19 = arith.addf %13, %18 : vector<4x128xf32>
      %c0_7 = arith.constant 0 : index
      %c0_8 = arith.constant 0 : index
      %c0_9 = arith.constant 0 : index
      %20 = vector.load %arg4[%c0_7, %c0_8, %c0_9] : memref<1x1x128xf32, #tpu.memory_space<vmem>>, vector<1x1x128xf32>
      %cst_10 = arith.constant dense<0.000000e+00> : vector<128xf32>
      %21 = vector.multi_reduction <add>, %19, %cst_10 [0] : vector<4x128xf32> to vector<128xf32>
      %22 = vector.shape_cast %21 : vector<128xf32> to vector<1x128xf32>
      %23 = vector.shape_cast %22 : vector<1x128xf32> to vector<1x1x128xf32>
      %24 = arith.addf %20, %23 : vector<1x1x128xf32>
      %c0_11 = arith.constant 0 : index
      %c0_12 = arith.constant 0 : index
      %c0_13 = arith.constant 0 : index
      %25 = vector.load %arg4[%c0_11, %c0_12, %c0_13] : memref<1x1x128xf32, #tpu.memory_space<vmem>>, vector<1x1x128xf32>
      tpu.vector_store %arg4[%c0_11, %c0_12, %c0_13], %24 {strides = array<i32>} : memref<1x1x128xf32, #tpu.memory_space<vmem>>, vector<1x1x128xf32>,
    } else {
    }
    return
  }
  func.func @transform_0(%arg0: i32, %arg1: i32) -> (i32, i32) {
    %c1_i32 = arith.constant 1 : i32
    %0 = arith.muli %arg0, %c1_i32 : i32
    %1 = arith.addi %0, %arg1 : i32
    %c0_i32 = arith.constant 0 : i32
    %c0_i32_0 = arith.constant 0 : i32
    return %1, %c0_i32 : i32, i32
  }
  func.func @transform_1(%arg0: i32, %arg1: i32) -> (i32, i32) {
    %c1_i32 = arith.constant 1 : i32
    %0 = arith.muli %arg0, %c1_i32 : i32
    %1 = arith.addi %0, %arg1 : i32
    %c0_i32 = arith.constant 0 : i32
    %c0_i32_0 = arith.constant 0 : i32
    return %1, %c0_i32 : i32, i32
  }
  func.func @transform_2(%arg0: i32, %arg1: i32) -> (i32, i32, i32) {
    %c0_i32 = arith.constant 0 : i32
    %c0_i32_0 = arith.constant 0 : i32
    %c0_i32_1 = arith.constant 0 : i32
    return %arg0, %c0_i32, %c0_i32_0 : i32, i32, i32
  }
}

</mosaic_0001>

<bundles_post_ra>
// kernel: criterion_forward.1
= control target key start
LH: loop header
LB: loop body
LE: loop exit
PB: predicated region body
PF: predicated region fallthrough
CT: control target
= control target key end

     0   :  { %v106_v0 = vmov 0.0   ;;  %vm75_vm1 = vcmask 1043456   ;;  %s137_s2 = inlined_call_operand.vmem [shape: f32[1,1,128], index: 2, kind: output, shape index: {}]   ;;  %s138_s0 = inlined_call_operand.vmem [shape: f32[4,128], index: 0, kind: input, shape index: {}]   ;;  %s139_s1 = inlined_call_operand.vmem [shape: f32[4,128], index: 1, kind: input, shape index: {}]  }
   0x1   :  { %50 = vst [vmem:[%s137_s2] sm:$0x1] %v106_v0  ;;  %v55_v1 = vld [vmem:[%s138_s0] sm:$0xf] }
   0x2   :  { %v60_v2 = vand.u32 2147483647, %v55_v1  ;;  %v56_v8 = vld [vmem:[%s139_s1] sm:$0xf]  ;;  %v57_v10 = vmax.f32 %v55_v1, 0.0 }
   0x3   :  { %v58_v11 = vmul.f32 %v56_v8, %v55_v1 }
   0x4   :  { %v61_v3 = vsub.f32 0.0, %v60_v2 }
   0x5   :  { %v59_v15 = vsub.f32 %v57_v10, %v58_v11 }
   0x6   :  { %v62_v4 = vmul.f32 1.442695, %v61_v3 }
   0x8   :  { %102 = vpow2.f32 %v62_v4  ;;  %v74_v25 = vld [vmem:[%s137_s2] sm:$0x1] }
  0x12   :  { %v103_v5 = vpop.eup %102 }
  0x13   :  { %v64_v6 = vadd.f32 1.0, %v103_v5  ;;  %v67_v7 = vmul.f32 -0.5, %v103_v5  ;;  %v70_v12 = vand.u32 2147483647, %v103_v5 }
  0x15   :  { %104 = vlog2.f32 %v64_v6  ;;  %v68_v9 = vadd.f32 1.0, %v67_v7  ;;  %vm71_vm0 = vcmp.lt.f32.partialorder %v70_v12, 0.0004427343 }
  0x17   :  { %v69_v13 = vmul.f32 %v103_v5, %v68_v9 }
  0x1f   :  { %v105_v14 = vpop.eup %104 }
  0x20   :  { %v66_v16 = vmul.f32 0.6931472, %v105_v14 }
  0x22   :  { %v72_v17 = vsel %vm71_vm0, %v69_v13, %v66_v16 }
  0x23   :  { %v73_v18 = vadd.f32 %v72_v17, %v59_v15 }
  0x25   :  { %v76_v19 = vsel %vm75_vm1, %v73_v18, 0.0 }
  0x26   :  { %v77_v20 = vrot.slane %v76_v19, 4 }
  0x28   :  { %v78_v21 = vadd.f32 %v77_v20, %v76_v19 }
  0x2a   :  { %v79_v22 = vrot.slane %v78_v21, 2 }
  0x2c   :  { %v80_v23 = vadd.f32 %v79_v22, %v78_v21 }
  0x2e   :  { %v81_v24 = vrot.slane %v80_v23, 1 }
  0x30   :  { %v82_v26 = vadd.f32 %v81_v24, %v80_v23 }
  0x32   :  { %v83_v27 = vadd.f32 %v82_v26, %v74_v25 }
  0x34   :  { %84 = vst [vmem:[%s137_s2] sm:$0x1] %v83_v27 }

</bundles_post_ra>
